<compile_context>
chip_gen: v7x
topology: tpu7x:2x2x1
jax: 0.10.0
libtpu: 0.0.40
codegen_flags: <defaults>
</compile_context>

<pallas_src>
import functools

import jax
import jax.numpy as jnp
from jax.experimental import pallas as pl
from jax.experimental.pallas import tpu as pltpu


# ----------------------------------------------------------------------------
# Tile selection helpers (exact divisors only -> no padding, no out slicing)
# ----------------------------------------------------------------------------
def _pick_m_tile(m):
    # Prefer >=2 blocks along M so both TensorCores (v7x megacore) get work.
    for t in (512, 256, 128, 64):
        if m % t == 0 and m // t >= 2:
            return t
    for t in (512, 256, 128, 64, 32, 16):
        if m % t == 0:
            return t
    return m  # full dim (always legal as a block shape)


def _pick_n_tile(n):
    if n % 256 == 0 and n > 256:
        return 256  # split the N axis (e.g. Cout=512 -> 2 blocks)
    return n


def _pick_k_tile(k):
    # K = kh*kw*Cin is at most 3*3*512 = 4608 here; a full-K block of bf16
    # operands stays far below the VMEM budget on every generation.
    if k <= 4608:
        return k
    for t in (4608, 2304, 2048, 1536, 1024, 512, 256, 128):
        if k % t == 0:
            return t
    return k


# ----------------------------------------------------------------------------
# Pallas GEMM kernel: out = [relu]( A @ W [+ residual] ), bf16 in / f32 acc
# ----------------------------------------------------------------------------
def _conv_gemm_kernel(*refs, has_residual, apply_relu):
    if has_residual:
        a_ref, w_ref, r_ref, o_ref, acc_ref = refs
    else:
        a_ref, w_ref, o_ref, acc_ref = refs
        r_ref = None

    k = pl.program_id(2)

    @pl.when(k == 0)
    def _():
        acc_ref[...] = jnp.zeros_like(acc_ref)

    acc_ref[...] += jnp.dot(a_ref[...], w_ref[...],
                            preferred_element_type=jnp.float32)

    @pl.when(k == pl.num_programs(2) - 1)
    def _():
        res = acc_ref[...]
        if has_residual:
            res = res + r_ref[...].astype(jnp.float32)
        if apply_relu:
            res = jnp.maximum(res, 0.0)
        o_ref[...] = res.astype(o_ref.dtype)


def conv_gemm(a, w, *, relu, residual=None):
    """A:(M,K) bf16, W:(K,N) bf16, residual:(M,N) bf16|None -> (M,N) bf16."""
    M, K = a.shape
    N = w.shape[1]
    tm, tn, tk = _pick_m_tile(M), _pick_n_tile(N), _pick_k_tile(K)
    grid = (M // tm, N // tn, K // tk)

    in_specs = [
        pl.BlockSpec((tm, tk), lambda i, j, k: (i, k)),
        pl.BlockSpec((tk, tn), lambda i, j, k: (k, j)),
    ]
    args = [a, w]
    if residual is not None:
        in_specs.append(pl.BlockSpec((tm, tn), lambda i, j, k: (i, j)))
        args.append(residual)

    return pl.pallas_call(
        functools.partial(_conv_gemm_kernel,
                          has_residual=residual is not None,
                          apply_relu=relu),
        out_shape=jax.ShapeDtypeStruct((M, N), jnp.bfloat16),
        grid_spec=pltpu.PrefetchScalarGridSpec(
            num_scalar_prefetch=0,
            grid=grid,
            in_specs=in_specs,
            out_specs=pl.BlockSpec((tm, tn), lambda i, j, k: (i, j)),
            scratch_shapes=[pltpu.VMEM((tm, tn), jnp.float32)],
        ),
        compiler_params=pltpu.CompilerParams(
            dimension_semantics=("parallel", "parallel", "arbitrary")),
    )(*args)


# ----------------------------------------------------------------------------
# Conv2d (bias=False) via im2col glue + Pallas GEMM hot path
# ----------------------------------------------------------------------------
def _im2col(x, k, stride, pad):
    # x: (N,H,W,C) -> (N*Hout*Wout, k*k*C); patch ordering (kh, kw, cin)
    if pad > 0:
        x = jnp.pad(x, ((0, 0), (pad, pad), (pad, pad), (0, 0)))
    n, hp, wp, c = x.shape
    hout = (hp - k) // stride + 1
    wout = (wp - k) // stride + 1
    cols = []
    for kh in range(k):
        for kw in range(k):
            cols.append(x[:, kh:kh + stride * hout:stride,
                          kw:kw + stride * wout:stride, :])
    patches = jnp.concatenate(cols, axis=-1)
    return patches.reshape(n * hout * wout, k * k * c), (n, hout, wout)


def conv2d(x, w_flat, k, stride, pad, *, relu, residual=None):
    # w_flat: (k*k*Cin, Cout), same (kh, kw, cin) row ordering as _im2col.
    a, (n, hout, wout) = _im2col(x, k, stride, pad)
    cout = w_flat.shape[1]
    r = residual.reshape(n * hout * wout, cout) if residual is not None else None
    out = conv_gemm(a, w_flat, relu=relu, residual=r)
    return out.reshape(n, hout, wout, cout)


# ----------------------------------------------------------------------------
# MaxPool2d(kernel=3, stride=2, padding=1) — window gather in glue, max kernel
# ----------------------------------------------------------------------------
def _max_reduce_kernel(x_ref, o_ref):
    x = x_ref[...]                     # (9, tm, C)
    m = x[0]
    for i in range(1, x.shape[0]):
        m = jnp.maximum(m, x[i])
    o_ref[...] = m


def maxpool_3x3_s2_p1(x):
    n, h, w, c = x.shape
    xp = jnp.pad(x, ((0, 0), (1, 1), (1, 1), (0, 0)),
                 constant_values=-jnp.inf)     # implicit -inf pad like torch
    ho = (h + 2 - 3) // 2 + 1
    wo = (w + 2 - 3) // 2 + 1
    wins = []
    for kh in range(3):
        for kw in range(3):
            wins.append(xp[:, kh:kh + 2 * ho:2, kw:kw + 2 * wo:2, :]
                        .reshape(n * ho * wo, c))
    stacked = jnp.stack(wins, axis=0)          # (9, M, C)
    M = n * ho * wo
    tm = _pick_m_tile(M)
    out = pl.pallas_call(
        _max_reduce_kernel,
        out_shape=jax.ShapeDtypeStruct((M, c), x.dtype),
        grid_spec=pltpu.PrefetchScalarGridSpec(
            num_scalar_prefetch=0,
            grid=(M // tm,),
            in_specs=[pl.BlockSpec((9, tm, c), lambda i: (0, i, 0))],
            out_specs=pl.BlockSpec((tm, c), lambda i: (i, 0)),
        ),
        compiler_params=pltpu.CompilerParams(
            dimension_semantics=("parallel",)),
    )(stacked)
    return out.reshape(n, ho, wo, c)


# ----------------------------------------------------------------------------
# Fused AdaptiveAvgPool2d((1,1)) + flatten + Linear head
# ----------------------------------------------------------------------------
def _avgpool_fc_kernel(x_ref, w_ref, b_ref, o_ref):
    pooled = jnp.mean(x_ref[...].astype(jnp.float32), axis=1)      # (N, C)
    o_ref[...] = (jnp.dot(pooled, w_ref[...].astype(jnp.float32),
                          preferred_element_type=jnp.float32)
                  + b_ref[...])


def avgpool_fc(x_nhwc, fc_w, fc_b):
    n, h, w, c = x_nhwc.shape
    x3 = x_nhwc.reshape(n, h * w, c)
    return pl.pallas_call(
        _avgpool_fc_kernel,
        out_shape=jax.ShapeDtypeStruct((n, fc_w.shape[1]), jnp.float32),
    )(x3, fc_w, fc_b)


# ----------------------------------------------------------------------------
# Parameters (deterministic synthetic init, bf16 pre-flattened conv weights)
# ----------------------------------------------------------------------------
def _conv_w(key, k, cin, cout):
    std = (2.0 / (k * k * cout)) ** 0.5        # kaiming_normal, mode='fan_out'
    w = jax.random.normal(key, (k, k, cin, cout), jnp.float32) * std
    return w.reshape(k * k * cin, cout).astype(jnp.bfloat16)


def make_params(key, in_channels=3, num_classes=1):
    params = {}
    key, k1 = jax.random.split(key)
    params["conv1_w"] = _conv_w(k1, 7, in_channels, 64)

    layers = []
    inplanes = 64
    for planes, stride in ((64, 1), (128, 2), (256, 2), (512, 2)):
        blocks = []
        for b in range(2):
            s = stride if b == 0 else 1
            key, ka, kb, kd = jax.random.split(key, 4)
            blk = {
                "stride": s,
                "conv1_w": _conv_w(ka, 3, inplanes, planes),
                "conv2_w": _conv_w(kb, 3, planes, planes),
                "down_w": (_conv_w(kd, 1, inplanes, planes)
                           if (s != 1 or inplanes != planes) else None),
            }
            inplanes = planes
            blocks.append(blk)
        layers.append(blocks)
    params["layers"] = layers

    key, kw = jax.random.split(key)
    params["fc_w"] = (jax.random.normal(kw, (512, num_classes), jnp.float32)
                      * (1.0 / 512 ** 0.5)).astype(jnp.bfloat16)
    params["fc_b"] = jnp.zeros((1, num_classes), jnp.float32)
    return params


# ----------------------------------------------------------------------------
# Forward pass
# ----------------------------------------------------------------------------
def basic_res_block(x, blk):
    identity = x
    out = conv2d(x, blk["conv1_w"], 3, blk["stride"], 1, relu=True)
    if blk["down_w"] is not None:
        identity = conv2d(x, blk["down_w"], 1, blk["stride"], 0, relu=False)
    # conv2 + residual add + relu fused in the GEMM epilogue
    out = conv2d(out, blk["conv2_w"], 3, 1, 1, relu=True, residual=identity)
    return out


def resnet_discriminator(x_nchw, params):
    x = jnp.transpose(x_nchw, (0, 2, 3, 1)).astype(jnp.bfloat16)  # NCHW->NHWC
    x = conv2d(x, params["conv1_w"], 7, 2, 3, relu=True)          # conv1+relu
    x = maxpool_3x3_s2_p1(x)                                      # maxpool
    for layer in params["layers"]:                                # layer1..4
        for blk in layer:
            x = basic_res_block(x, blk)
    return avgpool_fc(x, params["fc_w"], params["fc_b"])          # pool+fc


if __name__ == "__main__":
    key = jax.random.PRNGKey(0)
    pkey, xkey = jax.random.split(key)
    params = make_params(pkey, in_channels=3, num_classes=1)

    # Small input: batch=2, C=3, 32x32 spatial
    # (32 -> conv1 16 -> maxpool 8 -> layer2 4 -> layer3 2 -> layer4 1).
    x = jax.random.normal(xkey, (2, 3, 32, 32), jnp.float32)

    out = jax.block_until_ready(resnet_discriminator(x, params))
    assert out.shape == (2, 1) and out.dtype == jnp.float32
    assert bool(jnp.all(jnp.isfinite(out)))

    print("KERNEL_OK")
</pallas_src>

<mosaic_0001>
module attributes {stable_mosaic.version = 11 : i64} {
  func.func @_conv_gemm_kernel(%arg0: i32, %arg1: i32, %arg2: i32, %arg3: memref<256x147xbf16, #tpu.memory_space<vmem>>, %arg4: memref<147x64xbf16, #tpu.memory_space<vmem>>, %arg5: memref<256x64xbf16, #tpu.memory_space<vmem>>, %arg6: memref<256x64xf32, #tpu.memory_space<vmem>>) attributes {dimension_semantics = [#tpu.dimension_semantics<parallel>, #tpu.dimension_semantics<parallel>, #tpu.dimension_semantics<arbitrary>], iteration_bounds = array<i64: 2, 1, 1>, scalar_prefetch = 0 : i64, scratch_operands = 1 : i64, tpu.core_type = #tpu.core_type<tc>, window_params = [{transform_indices = @transform_0, window_bounds = array<i64: 256, 147>}, {transform_indices = @transform_1, window_bounds = array<i64: 147, 64>}, {transform_indices = @transform_2, window_bounds = array<i64: 256, 64>}]} {
    %c0_i32 = arith.constant 0 : i32
    %0 = arith.cmpi eq, %arg2, %c0_i32 : i32
    %1 = arith.extui %0 : i1 to i32
    %c0_i32_0 = arith.constant 0 : i32
    %2 = arith.cmpi ne, %1, %c0_i32_0 : i32
    scf.if %2 {
      %cst_10 = arith.constant 0.000000e+00 : f32
      %12 = vector.broadcast %cst_10 : f32 to vector<256x64xf32>
      %c0_11 = arith.constant 0 : index
      %c0_12 = arith.constant 0 : index
      %13 = vector.load %arg6[%c0_11, %c0_12] : memref<256x64xf32, #tpu.memory_space<vmem>>, vector<256x64xf32>
      tpu.vector_store %arg6[%c0_11, %c0_12], %12 {strides = array<i32>} : memref<256x64xf32, #tpu.memory_space<vmem>>, vector<256x64xf32>,
    } else {
    }
    %c0 = arith.constant 0 : index
    %c0_1 = arith.constant 0 : index
    %3 = vector.load %arg6[%c0, %c0_1] : memref<256x64xf32, #tpu.memory_space<vmem>>, vector<256x64xf32>
    %c0_2 = arith.constant 0 : index
    %c0_3 = arith.constant 0 : index
    %4 = vector.load %arg3[%c0_2, %c0_3] : memref<256x147xbf16, #tpu.memory_space<vmem>>, vector<256x147xbf16>
    %c0_4 = arith.constant 0 : index
    %c0_5 = arith.constant 0 : index
    %5 = vector.load %arg4[%c0_4, %c0_5] : memref<147x64xbf16, #tpu.memory_space<vmem>>, vector<147x64xbf16>
    %cst = arith.constant dense<0.000000e+00> : vector<256x64xf32>
    %6 = tpu.matmul %4, %5, %cst {dimension_numbers = #tpu.dot_dimension_numbers<[1], [0], [0], [1], [0, 0, 1, 1], [], []>} : vector<256x147xbf16>, vector<147x64xbf16>, vector<256x64xf32> -> vector<256x64xf32>
    %7 = arith.addf %3, %6 : vector<256x64xf32>
    %c0_6 = arith.constant 0 : index
    %c0_7 = arith.constant 0 : index
    %8 = vector.load %arg6[%c0_6, %c0_7] : memref<256x64xf32, #tpu.memory_space<vmem>>, vector<256x64xf32>
    tpu.vector_store %arg6[%c0_6, %c0_7], %7 {strides = array<i32>} : memref<256x64xf32, #tpu.memory_space<vmem>>, vector<256x64xf32>,
    %c0_i32_8 = arith.constant 0 : i32
    %9 = arith.cmpi eq, %arg2, %c0_i32_8 : i32
    %10 = arith.extui %9 : i1 to i32
    %c0_i32_9 = arith.constant 0 : i32
    %11 = arith.cmpi ne, %10, %c0_i32_9 : i32
    scf.if %11 {
      %c0_10 = arith.constant 0 : index
      %c0_11 = arith.constant 0 : index
      %12 = vector.load %arg6[%c0_10, %c0_11] : memref<256x64xf32, #tpu.memory_space<vmem>>, vector<256x64xf32>
      %cst_12 = arith.constant 0.000000e+00 : f32
      %13 = vector.broadcast %cst_12 : f32 to vector<256x64xf32>
      %14 = arith.maximumf %12, %13 : vector<256x64xf32>
      %15 = arith.truncf %14 : vector<256x64xf32> to vector<256x64xbf16>
      %c0_13 = arith.constant 0 : index
      %c0_14 = arith.constant 0 : index
      %16 = vector.load %arg5[%c0_13, %c0_14] : memref<256x64xbf16, #tpu.memory_space<vmem>>, vector<256x64xbf16>
      tpu.vector_store %arg5[%c0_13, %c0_14], %15 {strides = array<i32>} : memref<256x64xbf16, #tpu.memory_space<vmem>>, vector<256x64xbf16>,
    } else {
    }
    return
  }
  func.func @transform_0(%arg0: i32, %arg1: i32, %arg2: i32) -> (i32, i32) {
    %c0_i32 = arith.constant 0 : i32
    return %arg0, %arg2 : i32, i32
  }
  func.func @transform_1(%arg0: i32, %arg1: i32, %arg2: i32) -> (i32, i32) {
    %c0_i32 = arith.constant 0 : i32
    return %arg2, %arg1 : i32, i32
  }
  func.func @transform_2(%arg0: i32, %arg1: i32, %arg2: i32) -> (i32, i32) {
    %c0_i32 = arith.constant 0 : i32
    return %arg0, %arg1 : i32, i32
  }
}

</mosaic_0001>

<bundles_post_ra>
// kernel: tpu_custom_call.1
= control target key start
LH: loop header
LB: loop body
LE: loop exit
PB: predicated region body
PF: predicated region fallthrough
CT: control target
= control target key end

     0   :  { %s1443_s9 = smov 0   ;;  %s1445_s10 = smov 0   ;;  %s1712_s0 = inlined_call_operand.vmem [shape: bf16[512,147], index: 0, kind: input, shape index: {}]   ;;  %s1713_s1 = inlined_call_operand.vmem [shape: bf16[147,64], index: 1, kind: input, shape index: {}]   ;;  %s1714_s2 = inlined_call_operand.vmem [shape: bf16[512,64], index: 2, kind: output, shape index: {}]  }
   0x1   :  { %s1447_s11 = smov 0  }
   0x2 LB: > { %s31_s12 = sadd.s32 1, %s1419_s10  ;;  %p1165_p0 = scmp.ge.s32.totalorder %s1423_s11, 1  ;;  %s1423_s11 = sphi %s1447_s11, %s12_s11   ;;  %s1419_s10 = sphi %s1445_s10, %s1716_s10   ;;  %s1415_s9 = sphi %s1443_s9, %s1715_s9  }
   0x3   : > { %p33_p1 = scmp.ge.s32.totalorder %s31_s12, 2  ;;  %p158_p2 = scmp.lt.s32.totalorder %s1423_s11, 3 }
   0x5   : > { %s1718_s12 = smov (%p33_p1, %s31_s12), 0  ;;  %p159_p3 = pnand %p1165_p0, %p158_p2 }
   0x6   : > { %v1343_v0 = vld [vmem:[%s1713_s1] sm:$0xff] (!%p159_p3)   ;;  %v1425_v1 = vmov (!%p159_p3), 0   ;;  %v1344_v2 = vld [vmem:[%s1713_s1 + $0x8] sm:$0xff] (!%p159_p3)   ;;  %v1345_v3 = vld [vmem:[%s1713_s1 + $0x10] sm:$0xff] (!%p159_p3)   ;;  %s1166_s19 = sshll.u32 (!%p159_p3), %s1415_s9, 5  ;;  %vm231_vm0 = vcmask (!%p159_p3), 523264  }
   0x7   : > { %162 = sbr.rel (%p159_p3) target bundleno = 333 (0x14d), region = 28  ;;  %604 = vmatprep.subr.bf16.mxu0 (!%p159_p3), %v1425_v1  ;;  %1296 = vmatprep.subr.bf16.mxu1 (!%p159_p3), %v1425_v1  ;;  %p198_p4 = scmp.lt.s32.totalorder (!%p159_p3), %s1166_s19, 63  ;;  %v1346_v4 = vld [vmem:[%s1713_s1 + $0x18] sm:$0xff] (!%p159_p3)   ;;  %v1426_v5 = vmov (!%p159_p3), 0.0   ;;  %v1347_v6 = vld [vmem:[%s1713_s1 + $0x20] sm:$0xff] (!%p159_p3)   ;;  %vm548_vm1 = vcmask (!%p159_p3), 154624  }
   0x8   : > { %605 = vmatpush1.bf16.msra.mxu0 (!%p159_p3), %v1343_v0  ;;  %1306 = vmatpush1.bf16.msra.mxu1 (!%p159_p3), %v1343_v0  ;;  %232 = vst.msk [vmem:[#allocation2] sm:$0xff] (!%p159_p3), %vm231_vm0, %v1426_v5  ;;  %233 = vst.msk [vmem:[#allocation2 + $0x8] sm:$0xff] (!%p159_p3), %vm231_vm0, %v1426_v5  ;;  %v1348_v9 = vld [vmem:[%s1713_s1 + $0x28] sm:$0xff] (!%p159_p3)   ;;  %v1349_v10 = vld [vmem:[%s1713_s1 + $0x30] sm:$0xff] (!%p159_p3)   ;;  %vm597_vm2 = vcmask (!%p159_p3), 1040384   ;;  %vm598_vm3 = vcmask (!%p159_p3), 1041408  }
   0x9   : > { %606 = vmatprep.subr.bf16.mxu0 (!%p159_p3), %v1425_v1  ;;  %1297 = vmatprep.subr.bf16.mxu1 (!%p159_p3), %v1425_v1  ;;  %234 = vst.msk [vmem:[#allocation2 + $0x10] sm:$0xff] (!%p159_p3), %vm231_vm0, %v1426_v5  ;;  %235 = vst.msk [vmem:[#allocation2 + $0x18] sm:$0xff] (!%p159_p3), %vm231_vm0, %v1426_v5  ;;  %v1350_v11 = vld [vmem:[%s1713_s1 + $0x38] sm:$0xff] (!%p159_p3)   ;;  %v1427_v12 = vmov (!%p159_p3), 65535   ;;  %v1351_v14 = vld [vmem:[%s1713_s1 + $0x40] sm:$0xff] (!%p159_p3)   ;;  %vm1025_vm4 = vcmask (!%p159_p3), 519168  }
   0xa   : > { %236 = vst.msk [vmem:[#allocation2 + $0x20] sm:$0xff] (!%p159_p3), %vm231_vm0, %v1426_v5  ;;  %237 = vst.msk [vmem:[#allocation2 + $0x28] sm:$0xff] (!%p159_p3), %vm231_vm0, %v1426_v5  ;;  %v599_v13 = vsel (!%p159_p3), %vm597_vm2, 4294967295, %v1427_v12  ;;  %v1352_v15 = vld [vmem:[%s1713_s1 + $0x48] ss:$0 sps:$4 sm:$0x33] (!%p159_p3)  }
   0xb   : > { %238 = vst.msk [vmem:[#allocation2 + $0x30] sm:$0xff] (!%p159_p3), %vm231_vm0, %v1426_v5  ;;  %239 = vst.msk [vmem:[#allocation2 + $0x38] sm:$0xff] (!%p159_p3), %vm231_vm0, %v1426_v5  ;;  %v600_v16 = vsel (!%p159_p3), %vm598_vm3, %v599_v13, 0 }
   0xc   : > { %607 = vmatpush1.bf16.msra.mxu0 (!%p159_p3), %v1344_v2  ;;  %1307 = vmatpush1.bf16.msra.mxu1 (!%p159_p3), %v1344_v2  ;;  %240 = vst.msk [vmem:[#allocation2 + $0x40] sm:$0xff] (!%p159_p3), %vm231_vm0, %v1426_v5  ;;  %241 = vst.msk [vmem:[#allocation2 + $0x48] sm:$0xff] (!%p159_p3), %vm231_vm0, %v1426_v5  ;;  %v602_v17 = vand.u32 (!%p159_p3), %v1352_v15, %v600_v16 }
   0xd   : > { %608 = vmatprep.subr.bf16.mxu0 (!%p159_p3), %v1425_v1  ;;  %1298 = vmatprep.subr.bf16.mxu1 (!%p159_p3), %v1425_v1  ;;  %242 = vst.msk [vmem:[#allocation2 + $0x50] sm:$0xff] (!%p159_p3), %vm231_vm0, %v1426_v5  ;;  %243 = vst.msk [vmem:[#allocation2 + $0x58] sm:$0xff] (!%p159_p3), %vm231_vm0, %v1426_v5 }
   0xe   : > { %s1720_s19 = smov (!%p198_p4, %s1166_s19), 63  ;;  %244 = vst.msk [vmem:[#allocation2 + $0x60] sm:$0xff] %vm231_vm0, %v1426_v5  ;;  %245 = vst.msk [vmem:[#allocation2 + $0x68] sm:$0xff] %vm231_vm0, %v1426_v5 }
   0xf   : > { %s1263_s22 = sshll.u32 %s1720_s19, 3  ;;  %246 = vst.msk [vmem:[#allocation2 + $0x70] sm:$0xff] %vm231_vm0, %v1426_v5  ;;  %247 = vst.msk [vmem:[#allocation2 + $0x78] sm:$0xff] %vm231_vm0, %v1426_v5  ;;  %v264_v48 = vld [vmem:[#allocation2] sm:$0xff]  ;;  %v265_v52 = vld [vmem:[#allocation2 + $0x8] sm:$0xff]  ;;  %s1170_s13 = sshll.u32 %s1720_s19, 2 }
  0x10   : > { %609 = vmatpush1.bf16.msra.mxu0 %v1345_v3  ;;  %1308 = vmatpush1.bf16.msra.mxu1 %v1345_v3  ;;  %248 = vst.msk [vmem:[#allocation2 + $0x80] sm:$0xff] %vm231_vm0, %v1426_v5  ;;  %249 = vst.msk [vmem:[#allocation2 + $0x88] sm:$0xff] %vm231_vm0, %v1426_v5  ;;  %s1521_s25 = scalar_lea.vmem %s1712_s0, %s1263_s22  ;;  %v266_v0 = vld [vmem:[#allocation2 + $0x10] sm:$0xff]  ;;  %s1611_s16 = scalar_lea.vmem %s1714_s2, %s1170_s13 }
  0x11   : > { %610 = vmatprep.subr.bf16.mxu0 %v1425_v1  ;;  %1299 = vmatprep.subr.bf16.mxu1 %v1425_v1  ;;  %250 = vst.msk [vmem:[#allocation2 + $0x90] sm:$0xff] %vm231_vm0, %v1426_v5  ;;  %251 = vst.msk [vmem:[#allocation2 + $0x98] sm:$0xff] %vm231_vm0, %v1426_v5  ;;  %v1355_v7 = vld [vmem:[%s1521_s25 + $0x4] ss:$8 sps:$4 sm:$0xff]   ;;  %v1353_v18 = vld [vmem:[%s1521_s25] ss:$8 sps:$4 sm:$0xff]  }
  0x12   : > { %252 = vst.msk [vmem:[#allocation2 + $0xa0] sm:$0xff] %vm231_vm0, %v1426_v5  ;;  %253 = vst.msk [vmem:[#allocation2 + $0xa8] sm:$0xff] %vm231_vm0, %v1426_v5  ;;  %v1358_v8 = vld [vmem:[%s1521_s25 + $0x84] ss:$8 sps:$4 sm:$0xff]   ;;  %1213 = vmatprep.mubr.msk.bf16.mxu0 %vm548_vm1, %v1355_v7  ;;  %v1356_v19 = vld [vmem:[%s1521_s25 + $0x80] ss:$8 sps:$4 sm:$0xff]  }
  0x13   : > { %254 = vst.msk [vmem:[#allocation2 + $0xb0] sm:$0xff] %vm231_vm0, %v1426_v5  ;;  %255 = vst.msk [vmem:[#allocation2 + $0xb8] sm:$0xff] %vm231_vm0, %v1426_v5  ;;  %1221 = vmatprep.mubr.msk.bf16.mxu1 %vm548_vm1, %v1358_v8  ;;  %v1359_v20 = vld [vmem:[%s1521_s25 + $0x14] ss:$8 sps:$4 sm:$0xff]   ;;  %v1363_v22 = vld [vmem:[%s1521_s25 + $0x10] ss:$8 sps:$4 sm:$0xff]  }
  0x14   : > { %256 = vst.msk [vmem:[#allocation2 + $0xc0] sm:$0xff] %vm231_vm0, %v1426_v5  ;;  %257 = vst.msk [vmem:[#allocation2 + $0xc8] sm:$0xff] %vm231_vm0, %v1426_v5  ;;  %611 = vmatpush1.bf16.msra.mxu0 %v1346_v4  ;;  %1309 = vmatpush1.bf16.msra.mxu1 %v1346_v4  ;;  %v1361_v21 = vld [vmem:[%s1521_s25 + $0x94] ss:$8 sps:$4 sm:$0xff]   ;;  %v1364_v23 = vld [vmem:[%s1521_s25 + $0x90] ss:$8 sps:$4 sm:$0xff]  }
  0x15   : > { %258 = vst.msk [vmem:[#allocation2 + $0xd0] sm:$0xff] %vm231_vm0, %v1426_v5  ;;  %259 = vst.msk [vmem:[#allocation2 + $0xd8] sm:$0xff] %vm231_vm0, %v1426_v5  ;;  %612 = vmatprep.subr.bf16.mxu0 %v1425_v1  ;;  %1300 = vmatprep.subr.bf16.mxu1 %v1425_v1  ;;  %v1365_v24 = vld [vmem:[%s1521_s25 + $0x24] ss:$8 sps:$4 sm:$0xff]   ;;  %v1369_v26 = vld [vmem:[%s1521_s25 + $0x20] ss:$8 sps:$4 sm:$0xff]  }
  0x16   : > { %260 = vst.msk [vmem:[#allocation2 + $0xe0] sm:$0xff] %vm231_vm0, %v1426_v5  ;;  %261 = vst.msk [vmem:[#allocation2 + $0xe8] sm:$0xff] %vm231_vm0, %v1426_v5  ;;  %v1367_v25 = vld [vmem:[%s1521_s25 + $0xa4] ss:$8 sps:$4 sm:$0xff]   ;;  %v1370_v27 = vld [vmem:[%s1521_s25 + $0xa0] ss:$8 sps:$4 sm:$0xff]  }
  0x17   : > { %262 = vst.msk [vmem:[#allocation2 + $0xf0] sm:$0xff] %vm231_vm0, %v1426_v5  ;;  %263 = vst.msk [vmem:[#allocation2 + $0xf8] sm:$0xff] %vm231_vm0, %v1426_v5  ;;  %v1371_v28 = vld [vmem:[%s1521_s25 + $0x34] ss:$8 sps:$4 sm:$0xff]   ;;  %v1375_v30 = vld [vmem:[%s1521_s25 + $0x30] ss:$8 sps:$4 sm:$0xff]  }
  0x18   : > { %613 = vmatpush1.bf16.msra.mxu0 %v1347_v6  ;;  %1310 = vmatpush1.bf16.msra.mxu1 %v1347_v6  ;;  %v1373_v29 = vld [vmem:[%s1521_s25 + $0xb4] ss:$8 sps:$4 sm:$0xff]   ;;  %v1376_v31 = vld [vmem:[%s1521_s25 + $0xb0] ss:$8 sps:$4 sm:$0xff]   ;;  %v1377_v32 = vld [vmem:[%s1521_s25 + $0x44] ss:$8 sps:$4 sm:$0xff]  }
  0x19   : > { %614 = vmatprep.subr.bf16.mxu0 %v1425_v1  ;;  %1301 = vmatprep.subr.bf16.mxu1 %v1425_v1  ;;  %v1379_v33 = vld [vmem:[%s1521_s25 + $0xc4] ss:$8 sps:$4 sm:$0xff]   ;;  %v1381_v34 = vld [vmem:[%s1521_s25 + $0x40] ss:$8 sps:$4 sm:$0xff]   ;;  %v1383_v36 = vld [vmem:[%s1521_s25 + $0x54] ss:$8 sps:$4 sm:$0xff]  }
  0x1a   : > { %v1382_v35 = vld [vmem:[%s1521_s25 + $0xc0] ss:$8 sps:$4 sm:$0xff]   ;;  %v1385_v37 = vld [vmem:[%s1521_s25 + $0xd4] ss:$8 sps:$4 sm:$0xff]   ;;  %v1387_v38 = vld [vmem:[%s1521_s25 + $0x50] ss:$8 sps:$4 sm:$0xff]  }
  0x1b   : > { %v1388_v39 = vld [vmem:[%s1521_s25 + $0xd0] ss:$8 sps:$4 sm:$0xff]   ;;  %v1389_v40 = vld [vmem:[%s1521_s25 + $0x64] ss:$8 sps:$4 sm:$0xff]   ;;  %v1393_v42 = vld [vmem:[%s1521_s25 + $0x60] ss:$8 sps:$4 sm:$0xff]  }
  0x1c   : > { %615 = vmatpush1.bf16.msra.mxu0 %v1348_v9  ;;  %1311 = vmatpush1.bf16.msra.mxu1 %v1348_v9  ;;  %v1391_v41 = vld [vmem:[%s1521_s25 + $0xe4] ss:$8 sps:$4 sm:$0xff]   ;;  %v1394_v43 = vld [vmem:[%s1521_s25 + $0xe0] ss:$8 sps:$4 sm:$0xff]   ;;  %v1395_v44 = vld [vmem:[%s1521_s25 + $0x74] ss:$8 sps:$4 sm:$0xff]  }
  0x1d   : > { %616 = vmatprep.subr.bf16.mxu0 %v1425_v1  ;;  %1302 = vmatprep.subr.bf16.mxu1 %v1425_v1  ;;  %v1397_v45 = vld [vmem:[%s1521_s25 + $0xf4] ss:$8 sps:$4 sm:$0xff]   ;;  %v1399_v46 = vld [vmem:[%s1521_s25 + $0x70] ss:$8 sps:$4 sm:$0xff]   ;;  %v280_v49 = vld [vmem:[#allocation2 + $0x80] sm:$0xff] }
  0x1e   : > { %v1400_v47 = vld [vmem:[%s1521_s25 + $0xf0] ss:$8 sps:$4 sm:$0xff]   ;;  %v281_v53 = vld [vmem:[#allocation2 + $0x88] sm:$0xff] }
  0x1f   : > { %v267_v4 = vld [vmem:[#allocation2 + $0x18] sm:$0xff] }
  0x20   : > { %617 = vmatpush1.bf16.msra.mxu0 %v1349_v10  ;;  %1312 = vmatpush1.bf16.msra.mxu1 %v1349_v10  ;;  %v283_v5 = vld [vmem:[#allocation2 + $0x98] sm:$0xff] }
  0x21   : > { %618 = vmatprep.subr.bf16.mxu0 %v1425_v1  ;;  %1303 = vmatprep.subr.bf16.mxu1 %v1425_v1 }
  0x24   : > { %619 = vmatpush1.bf16.msra.mxu0 %v1350_v11  ;;  %1313 = vmatpush1.bf16.msra.mxu1 %v1350_v11 }
  0x25   : > { %620 = vmatprep.subr.bf16.mxu0 %v1425_v1  ;;  %1304 = vmatprep.subr.bf16.mxu1 %v1425_v1 }
  0x28   : > { %621 = vmatpush1.bf16.msra.mxu0 %v1351_v14  ;;  %1314 = vmatpush1.bf16.msra.mxu1 %v1351_v14 }
  0x29   : > { %622 = vmatprep.subr.bf16.mxu0 %v1425_v1  ;;  %1305 = vmatprep.subr.bf16.mxu1 %v1425_v1  ;;  %v282_v1 = vld [vmem:[#allocation2 + $0x90] sm:$0xff] }
  0x2c   : > { %623 = vmatpush1.bf16.msra.mxu0 %v602_v17  ;;  %1315 = vmatpush1.bf16.msra.mxu1 %v602_v17 }
  0x2f   : > { %637 = vmatmul.mubr.bf16.vlgmr.msra.gmra.mrb[0].mxu0 %v1353_v18  ;;  %701 = vmatmul.mubr.bf16.vlgmr.msra.gmra.mrb[0].mxu1 %v1356_v19 }
  0x30   : > { %1214 = vmatprep.mubr.msk.bf16.mxu0 %vm548_vm1, %v1359_v20  ;;  %1222 = vmatprep.mubr.msk.bf16.mxu1 %vm548_vm1, %v1361_v21 }
  0x37   : > { %645 = vmatmul.mubr.bf16.gmra.mrb[4].mxu0 %v1363_v22  ;;  %709 = vmatmul.mubr.bf16.gmra.mrb[4].mxu1 %v1364_v23 }
  0x38   : > { %1215 = vmatprep.mubr.msk.bf16.mxu0 %vm548_vm1, %v1365_v24  ;;  %1223 = vmatprep.mubr.msk.bf16.mxu1 %vm548_vm1, %v1367_v25 }
  0x3f   : > { %653 = vmatmul.mubr.bf16.gmra.mrb[8].mxu0 %v1369_v26  ;;  %717 = vmatmul.mubr.bf16.gmra.mrb[8].mxu1 %v1370_v27  ;;  %v268_v26 = vld [vmem:[#allocation2 + $0x20] sm:$0xff] }
  0x40   : > { %1216 = vmatprep.mubr.msk.bf16.mxu0 %vm548_vm1, %v1371_v28  ;;  %1224 = vmatprep.mubr.msk.bf16.mxu1 %vm548_vm1, %v1373_v29  ;;  %v284_v27 = vld [vmem:[#allocation2 + $0xa0] sm:$0xff] }
  0x47   : > { %661 = vmatmul.mubr.bf16.gmra.mrb[12].mxu0 %v1375_v30  ;;  %725 = vmatmul.mubr.bf16.gmra.mrb[12].mxu1 %v1376_v31 }
  0x48   : > { %1217 = vmatprep.mubr.msk.bf16.mxu0 %vm548_vm1, %v1377_v32  ;;  %1225 = vmatprep.mubr.msk.bf16.mxu1 %vm548_vm1, %v1379_v33  ;;  %v269_v32 = vld [vmem:[#allocation2 + $0x28] sm:$0xff] }
  0x49   : > { %v285_v33 = vld [vmem:[#allocation2 + $0xa8] sm:$0xff] }
  0x4f   : > { %669 = vmatmul.mubr.bf16.gmra.mrb[16].mxu0 %v1381_v34  ;;  %733 = vmatmul.mubr.bf16.gmra.mrb[16].mxu1 %v1382_v35 }
  0x50   : > { %1218 = vmatprep.mubr.msk.bf16.mxu0 %vm548_vm1, %v1383_v36  ;;  %1226 = vmatprep.mubr.msk.bf16.mxu1 %vm548_vm1, %v1385_v37 }
  0x57   : > { %677 = vmatmul.mubr.bf16.gmra.mrb[20].mxu0 %v1387_v38  ;;  %741 = vmatmul.mubr.bf16.gmra.mrb[20].mxu1 %v1388_v39 }
  0x58   : > { %1219 = vmatprep.mubr.msk.bf16.mxu0 %vm548_vm1, %v1389_v40  ;;  %1227 = vmatprep.mubr.msk.bf16.mxu1 %vm548_vm1, %v1391_v41 }
  0x5f   : > { %685 = vmatmul.mubr.bf16.gmra.mrb[24].mxu0 %v1393_v42  ;;  %749 = vmatmul.mubr.bf16.gmra.mrb[24].mxu1 %v1394_v43 }
  0x60   : > { %1220 = vmatprep.mubr.msk.bf16.mxu0 %vm548_vm1, %v1395_v44  ;;  %1228 = vmatprep.mubr.msk.bf16.mxu1 %vm548_vm1, %v1397_v45 }
  0x67   : > { %693 = vmatmul.mubr.bf16.gmra.mrb[28].mxu0 %v1399_v46  ;;  %757 = vmatmul.mubr.bf16.gmra.mrb[28].mxu1 %v1400_v47 }
 0x102   : > { %v638_v50 = vpop.f32.mrb[0].mxu0  ;;  %v702_v51 = vpop.f32.mrb[0].mxu1 }
 0x103   : > { %v765_v54 = vadd.f32 %v638_v50, %v264_v48  ;;  %v781_v55 = vadd.f32 %v702_v51, %v280_v49  ;;  %v640_v56 = vpop.f32.mrb[1].mxu0  ;;  %v704_v57 = vpop.f32.mrb[1].mxu1 }
 0x104   : > { %v641_v58 = vpop.f32.mrb[2].mxu0  ;;  %v705_v59 = vpop.f32.mrb[2].mxu1 }
 0x105   : > { %798 = vst.msk [vmem:[#allocation2] sm:$0xff] %vm231_vm0, %v765_v54  ;;  %814 = vst.msk [vmem:[#allocation2 + $0x80] sm:$0xff] %vm231_vm0, %v781_v55  ;;  %v766_v60 = vadd.f32 %v641_v58, %v265_v52  ;;  %v782_v61 = vadd.f32 %v705_v59, %v281_v53  ;;  %v643_v62 = vpop.f32.mrb[3].mxu0  ;;  %v707_v63 = vpop.f32.mrb[3].mxu1  ;;  %v270_v54 = vld [vmem:[#allocation2 + $0x30] sm:$0xff] }
 0x106   : > { %v286_v55 = vld [vmem:[#allocation2 + $0xb0] sm:$0xff] }
 0x107   : > { %799 = vst.msk [vmem:[#allocation2 + $0x8] sm:$0xff] %vm231_vm0, %v766_v60  ;;  %815 = vst.msk [vmem:[#allocation2 + $0x88] sm:$0xff] %vm231_vm0, %v782_v61  ;;  %v271_v60 = vld [vmem:[#allocation2 + $0x38] sm:$0xff] }
 0x108   : > { %v287_v61 = vld [vmem:[#allocation2 + $0xb8] sm:$0xff] }
 0x10a   : > { %v646_v2 = vpop.f32.mrb[4].mxu0  ;;  %v710_v3 = vpop.f32.mrb[4].mxu1 }
 0x10b   : > { %v767_v6 = vadd.f32 %v646_v2, %v266_v0  ;;  %v783_v7 = vadd.f32 %v710_v3, %v282_v1  ;;  %v648_v8 = vpop.f32.mrb[5].mxu0  ;;  %v712_v9 = vpop.f32.mrb[5].mxu1 }
 0x10c   : > { %v833_v10 = vld [vmem:[#allocation2] sm:$0xff]  ;;  %v649_v12 = vpop.f32.mrb[6].mxu0  ;;  %v713_v13 = vpop.f32.mrb[6].mxu1 }
 0x10d   : > { %v849_v11 = vld [vmem:[#allocation2 + $0x80] sm:$0xff]  ;;  %v865_v14 = vmax.f32 %v833_v10, 0.0  ;;  %800 = vst.msk [vmem:[#allocation2 + $0x10] sm:$0xff] %vm231_vm0, %v767_v6  ;;  %816 = vst.msk [vmem:[#allocation2 + $0x90] sm:$0xff] %vm231_vm0, %v783_v7  ;;  %v768_v16 = vadd.f32 %v649_v12, %v267_v4  ;;  %v784_v17 = vadd.f32 %v713_v13, %v283_v5  ;;  %v651_v18 = vpop.f32.mrb[7].mxu0  ;;  %v715_v19 = vpop.f32.mrb[7].mxu1 }
 0x10e   : > { %v881_v15 = vmax.f32 %v849_v11, 0.0  ;;  %v834_v20 = vld [vmem:[#allocation2 + $0x8] sm:$0xff]  ;;  %v272_v18 = vld [vmem:[#allocation2 + $0x40] sm:$0xff] }
 0x10f   : > { %v850_v21 = vld [vmem:[#allocation2 + $0x88] sm:$0xff]  ;;  %v1264_v22 = vpack.c.bf16 %v865_v14, %v865_v14  ;;  %v866_v24 = vmax.f32 %v834_v20, 0.0  ;;  %801 = vst.msk [vmem:[#allocation2 + $0x18] sm:$0xff] %vm231_vm0, %v768_v16  ;;  %817 = vst.msk [vmem:[#allocation2 + $0x98] sm:$0xff] %vm231_vm0, %v784_v17  ;;  %v288_v19 = vld [vmem:[#allocation2 + $0xc0] sm:$0xff] }
 0x110   : > { %v1280_v23 = vpack.c.bf16 %v881_v15, %v881_v15  ;;  %v882_v25 = vmax.f32 %v850_v21, 0.0 }
 0x111   : > { %1026 = vst.msk [vmem:[%s1611_s16] sm:$0xf] %vm1025_vm4, %v1264_v22  ;;  %v1265_v28 = vpack.c.bf16 %v866_v24, %v866_v24  ;;  %v273_v24 = vld [vmem:[#allocation2 + $0x48] sm:$0xff] }
 0x112   : > { %1042 = vst.msk [vmem:[%s1611_s16 + $0x40] sm:$0xf] %vm1025_vm4, %v1280_v23  ;;  %v1281_v29 = vpack.c.bf16 %v882_v25, %v882_v25  ;;  %v654_v30 = vpop.f32.mrb[8].mxu0  ;;  %v718_v31 = vpop.f32.mrb[8].mxu1  ;;  %v289_v25 = vld [vmem:[#allocation2 + $0xc8] sm:$0xff] }
 0x113   : > { %1027 = vst.msk [vmem:[%s1611_s16 + $0x4] sm:$0xf] %vm1025_vm4, %v1265_v28  ;;  %v769_v34 = vadd.f32 %v654_v30, %v268_v26  ;;  %v785_v35 = vadd.f32 %v718_v31, %v284_v27  ;;  %v656_v36 = vpop.f32.mrb[9].mxu0  ;;  %v720_v37 = vpop.f32.mrb[9].mxu1 }
 0x114   : > { %1043 = vst.msk [vmem:[%s1611_s16 + $0x44] sm:$0xf] %vm1025_vm4, %v1281_v29  ;;  %v835_v38 = vld [vmem:[#allocation2 + $0x10] sm:$0xff]  ;;  %v657_v40 = vpop.f32.mrb[10].mxu0  ;;  %v721_v41 = vpop.f32.mrb[10].mxu1 }
 0x115   : > { %v851_v39 = vld [vmem:[#allocation2 + $0x90] sm:$0xff]  ;;  %v867_v42 = vmax.f32 %v835_v38, 0.0  ;;  %802 = vst.msk [vmem:[#allocation2 + $0x20] sm:$0xff] %vm231_vm0, %v769_v34  ;;  %818 = vst.msk [vmem:[#allocation2 + $0xa0] sm:$0xff] %vm231_vm0, %v785_v35  ;;  %v770_v44 = vadd.f32 %v657_v40, %v269_v32  ;;  %v786_v45 = vadd.f32 %v721_v41, %v285_v33  ;;  %v659_v46 = vpop.f32.mrb[11].mxu0  ;;  %v723_v47 = vpop.f32.mrb[11].mxu1 }
 0x116   : > { %v883_v43 = vmax.f32 %v851_v39, 0.0  ;;  %v836_v48 = vld [vmem:[#allocation2 + $0x18] sm:$0xff]  ;;  %v274_v46 = vld [vmem:[#allocation2 + $0x50] sm:$0xff] }
 0x117   : > { %v852_v49 = vld [vmem:[#allocation2 + $0x98] sm:$0xff]  ;;  %v1266_v50 = vpack.c.bf16 %v867_v42, %v867_v42  ;;  %v868_v52 = vmax.f32 %v836_v48, 0.0  ;;  %803 = vst.msk [vmem:[#allocation2 + $0x28] sm:$0xff] %vm231_vm0, %v770_v44  ;;  %819 = vst.msk [vmem:[#allocation2 + $0xa8] sm:$0xff] %vm231_vm0, %v786_v45  ;;  %v290_v47 = vld [vmem:[#allocation2 + $0xd0] sm:$0xff] }
 0x118   : > { %v1282_v51 = vpack.c.bf16 %v883_v43, %v883_v43  ;;  %v884_v53 = vmax.f32 %v852_v49, 0.0 }
 0x119   : > { %1028 = vst.msk [vmem:[%s1611_s16 + $0x8] sm:$0xf] %vm1025_vm4, %v1266_v50  ;;  %v1267_v56 = vpack.c.bf16 %v868_v52, %v868_v52  ;;  %v275_v52 = vld [vmem:[#allocation2 + $0x58] sm:$0xff] }
 0x11a   : > { %1044 = vst.msk [vmem:[%s1611_s16 + $0x48] sm:$0xf] %vm1025_vm4, %v1282_v51  ;;  %v1283_v57 = vpack.c.bf16 %v884_v53, %v884_v53  ;;  %v662_v58 = vpop.f32.mrb[12].mxu0  ;;  %v726_v59 = vpop.f32.mrb[12].mxu1  ;;  %v291_v53 = vld [vmem:[#allocation2 + $0xd8] sm:$0xff] }
 0x11b   : > { %1029 = vst.msk [vmem:[%s1611_s16 + $0xc] sm:$0xf] %vm1025_vm4, %v1267_v56  ;;  %v771_v62 = vadd.f32 %v662_v58, %v270_v54  ;;  %v787_v63 = vadd.f32 %v726_v59, %v286_v55  ;;  %v664_v0 = vpop.f32.mrb[13].mxu0  ;;  %v728_v1 = vpop.f32.mrb[13].mxu1 }
 0x11c   : > { %1045 = vst.msk [vmem:[%s1611_s16 + $0x4c] sm:$0xf] %vm1025_vm4, %v1283_v57  ;;  %v837_v2 = vld [vmem:[#allocation2 + $0x20] sm:$0xff]  ;;  %v665_v4 = vpop.f32.mrb[14].mxu0  ;;  %v729_v5 = vpop.f32.mrb[14].mxu1 }
 0x11d   : > { %v853_v3 = vld [vmem:[#allocation2 + $0xa0] sm:$0xff]  ;;  %v869_v6 = vmax.f32 %v837_v2, 0.0  ;;  %804 = vst.msk [vmem:[#allocation2 + $0x30] sm:$0xff] %vm231_vm0, %v771_v62  ;;  %820 = vst.msk [vmem:[#allocation2 + $0xb0] sm:$0xff] %vm231_vm0, %v787_v63  ;;  %v772_v8 = vadd.f32 %v665_v4, %v271_v60  ;;  %v788_v9 = vadd.f32 %v729_v5, %v287_v61  ;;  %v667_v10 = vpop.f32.mrb[15].mxu0  ;;  %v731_v11 = vpop.f32.mrb[15].mxu1 }
 0x11e   : > { %v885_v7 = vmax.f32 %v853_v3, 0.0  ;;  %v838_v12 = vld [vmem:[#allocation2 + $0x28] sm:$0xff]  ;;  %v276_v10 = vld [vmem:[#allocation2 + $0x60] sm:$0xff] }
 0x11f   : > { %v854_v13 = vld [vmem:[#allocation2 + $0xa8] sm:$0xff]  ;;  %v1268_v14 = vpack.c.bf16 %v869_v6, %v869_v6  ;;  %v870_v16 = vmax.f32 %v838_v12, 0.0  ;;  %805 = vst.msk [vmem:[#allocation2 + $0x38] sm:$0xff] %vm231_vm0, %v772_v8  ;;  %821 = vst.msk [vmem:[#allocation2 + $0xb8] sm:$0xff] %vm231_vm0, %v788_v9  ;;  %v292_v11 = vld [vmem:[#allocation2 + $0xe0] sm:$0xff] }
 0x120   : > { %v1284_v15 = vpack.c.bf16 %v885_v7, %v885_v7  ;;  %v886_v17 = vmax.f32 %v854_v13, 0.0 }
 0x121   : > { %1030 = vst.msk [vmem:[%s1611_s16 + $0x10] sm:$0xf] %vm1025_vm4, %v1268_v14  ;;  %v1269_v20 = vpack.c.bf16 %v870_v16, %v870_v16  ;;  %v277_v16 = vld [vmem:[#allocation2 + $0x68] sm:$0xff] }
 0x122   : > { %1046 = vst.msk [vmem:[%s1611_s16 + $0x50] sm:$0xf] %vm1025_vm4, %v1284_v15  ;;  %v1285_v21 = vpack.c.bf16 %v886_v17, %v886_v17  ;;  %v670_v22 = vpop.f32.mrb[16].mxu0  ;;  %v734_v23 = vpop.f32.mrb[16].mxu1  ;;  %v293_v17 = vld [vmem:[#allocation2 + $0xe8] sm:$0xff] }
 0x123   : > { %1031 = vst.msk [vmem:[%s1611_s16 + $0x14] sm:$0xf] %vm1025_vm4, %v1269_v20  ;;  %v773_v26 = vadd.f32 %v670_v22, %v272_v18  ;;  %v789_v27 = vadd.f32 %v734_v23, %v288_v19  ;;  %v672_v28 = vpop.f32.mrb[17].mxu0  ;;  %v736_v29 = vpop.f32.mrb[17].mxu1 }
 0x124   : > { %1047 = vst.msk [vmem:[%s1611_s16 + $0x54] sm:$0xf] %vm1025_vm4, %v1285_v21  ;;  %v839_v30 = vld [vmem:[#allocation2 + $0x30] sm:$0xff]  ;;  %v673_v32 = vpop.f32.mrb[18].mxu0  ;;  %v737_v33 = vpop.f32.mrb[18].mxu1 }
 0x125   : > { %v855_v31 = vld [vmem:[#allocation2 + $0xb0] sm:$0xff]  ;;  %v871_v34 = vmax.f32 %v839_v30, 0.0  ;;  %806 = vst.msk [vmem:[#allocation2 + $0x40] sm:$0xff] %vm231_vm0, %v773_v26  ;;  %822 = vst.msk [vmem:[#allocation2 + $0xc0] sm:$0xff] %vm231_vm0, %v789_v27  ;;  %v774_v36 = vadd.f32 %v673_v32, %v273_v24  ;;  %v790_v37 = vadd.f32 %v737_v33, %v289_v25  ;;  %v675_v38 = vpop.f32.mrb[19].mxu0  ;;  %v739_v39 = vpop.f32.mrb[19].mxu1 }
 0x126   : > { %v887_v35 = vmax.f32 %v855_v31, 0.0  ;;  %v840_v40 = vld [vmem:[#allocation2 + $0x38] sm:$0xff]  ;;  %v278_v38 = vld [vmem:[#allocation2 + $0x70] sm:$0xff] }
 0x127   : > { %v856_v41 = vld [vmem:[#allocation2 + $0xb8] sm:$0xff]  ;;  %v1270_v42 = vpack.c.bf16 %v871_v34, %v871_v34  ;;  %v872_v44 = vmax.f32 %v840_v40, 0.0  ;;  %807 = vst.msk [vmem:[#allocation2 + $0x48] sm:$0xff] %vm231_vm0, %v774_v36  ;;  %823 = vst.msk [vmem:[#allocation2 + $0xc8] sm:$0xff] %vm231_vm0, %v790_v37  ;;  %v294_v39 = vld [vmem:[#allocation2 + $0xf0] sm:$0xff] }
 0x128   : > { %v1286_v43 = vpack.c.bf16 %v887_v35, %v887_v35  ;;  %v888_v45 = vmax.f32 %v856_v41, 0.0 }
 0x129   : > { %1032 = vst.msk [vmem:[%s1611_s16 + $0x18] sm:$0xf] %vm1025_vm4, %v1270_v42  ;;  %v1271_v48 = vpack.c.bf16 %v872_v44, %v872_v44  ;;  %v279_v44 = vld [vmem:[#allocation2 + $0x78] sm:$0xff] }
 0x12a   : > { %1048 = vst.msk [vmem:[%s1611_s16 + $0x58] sm:$0xf] %vm1025_vm4, %v1286_v43  ;;  %v1287_v49 = vpack.c.bf16 %v888_v45, %v888_v45  ;;  %v678_v50 = vpop.f32.mrb[20].mxu0  ;;  %v742_v51 = vpop.f32.mrb[20].mxu1  ;;  %v295_v45 = vld [vmem:[#allocation2 + $0xf8] sm:$0xff] }
 0x12b   : > { %1033 = vst.msk [vmem:[%s1611_s16 + $0x1c] sm:$0xf] %vm1025_vm4, %v1271_v48  ;;  %v775_v54 = vadd.f32 %v678_v50, %v274_v46  ;;  %v791_v55 = vadd.f32 %v742_v51, %v290_v47  ;;  %v680_v56 = vpop.f32.mrb[21].mxu0  ;;  %v744_v57 = vpop.f32.mrb[21].mxu1 }
 0x12c   : > { %1049 = vst.msk [vmem:[%s1611_s16 + $0x5c] sm:$0xf] %vm1025_vm4, %v1287_v49  ;;  %v841_v58 = vld [vmem:[#allocation2 + $0x40] sm:$0xff]  ;;  %v681_v60 = vpop.f32.mrb[22].mxu0  ;;  %v745_v61 = vpop.f32.mrb[22].mxu1 }
 0x12d   : > { %v857_v59 = vld [vmem:[#allocation2 + $0xc0] sm:$0xff]  ;;  %v873_v62 = vmax.f32 %v841_v58, 0.0  ;;  %808 = vst.msk [vmem:[#allocation2 + $0x50] sm:$0xff] %vm231_vm0, %v775_v54  ;;  %824 = vst.msk [vmem:[#allocation2 + $0xd0] sm:$0xff] %vm231_vm0, %v791_v55  ;;  %v776_v0 = vadd.f32 %v681_v60, %v275_v52  ;;  %v792_v1 = vadd.f32 %v745_v61, %v291_v53  ;;  %v683_v2 = vpop.f32.mrb[23].mxu0  ;;  %v747_v3 = vpop.f32.mrb[23].mxu1 }
 0x12e   : > { %v889_v63 = vmax.f32 %v857_v59, 0.0  ;;  %v842_v4 = vld [vmem:[#allocation2 + $0x48] sm:$0xff] }
 0x12f   : > { %v858_v5 = vld [vmem:[#allocation2 + $0xc8] sm:$0xff]  ;;  %v1272_v6 = vpack.c.bf16 %v873_v62, %v873_v62  ;;  %v874_v8 = vmax.f32 %v842_v4, 0.0  ;;  %809 = vst.msk [vmem:[#allocation2 + $0x58] sm:$0xff] %vm231_vm0, %v776_v0  ;;  %825 = vst.msk [vmem:[#allocation2 + $0xd8] sm:$0xff] %vm231_vm0, %v792_v1 }
 0x130   : > { %v1288_v7 = vpack.c.bf16 %v889_v63, %v889_v63  ;;  %v890_v9 = vmax.f32 %v858_v5, 0.0 }
 0x131   : > { %1034 = vst.msk [vmem:[%s1611_s16 + $0x20] sm:$0xf] %vm1025_vm4, %v1272_v6  ;;  %v1273_v12 = vpack.c.bf16 %v874_v8, %v874_v8 }
 0x132   : > { %1050 = vst.msk [vmem:[%s1611_s16 + $0x60] sm:$0xf] %vm1025_vm4, %v1288_v7  ;;  %v1289_v13 = vpack.c.bf16 %v890_v9, %v890_v9  ;;  %v686_v14 = vpop.f32.mrb[24].mxu0  ;;  %v750_v15 = vpop.f32.mrb[24].mxu1 }
 0x133   : > { %1035 = vst.msk [vmem:[%s1611_s16 + $0x24] sm:$0xf] %vm1025_vm4, %v1273_v12  ;;  %v777_v18 = vadd.f32 %v686_v14, %v276_v10  ;;  %v793_v19 = vadd.f32 %v750_v15, %v292_v11  ;;  %v688_v20 = vpop.f32.mrb[25].mxu0  ;;  %v752_v21 = vpop.f32.mrb[25].mxu1 }
 0x134   : > { %1051 = vst.msk [vmem:[%s1611_s16 + $0x64] sm:$0xf] %vm1025_vm4, %v1289_v13  ;;  %v843_v22 = vld [vmem:[#allocation2 + $0x50] sm:$0xff]  ;;  %v689_v24 = vpop.f32.mrb[26].mxu0  ;;  %v753_v25 = vpop.f32.mrb[26].mxu1 }
 0x135   : > { %v859_v23 = vld [vmem:[#allocation2 + $0xd0] sm:$0xff]  ;;  %v875_v26 = vmax.f32 %v843_v22, 0.0  ;;  %810 = vst.msk [vmem:[#allocation2 + $0x60] sm:$0xff] %vm231_vm0, %v777_v18  ;;  %826 = vst.msk [vmem:[#allocation2 + $0xe0] sm:$0xff] %vm231_vm0, %v793_v19  ;;  %v778_v28 = vadd.f32 %v689_v24, %v277_v16  ;;  %v794_v29 = vadd.f32 %v753_v25, %v293_v17  ;;  %v691_v30 = vpop.f32.mrb[27].mxu0  ;;  %v755_v31 = vpop.f32.mrb[27].mxu1 }
 0x136   : > { %v891_v27 = vmax.f32 %v859_v23, 0.0  ;;  %v844_v32 = vld [vmem:[#allocation2 + $0x58] sm:$0xff] }
 0x137   : > { %v860_v33 = vld [vmem:[#allocation2 + $0xd8] sm:$0xff]  ;;  %v1274_v34 = vpack.c.bf16 %v875_v26, %v875_v26  ;;  %v876_v36 = vmax.f32 %v844_v32, 0.0  ;;  %811 = vst.msk [vmem:[#allocation2 + $0x68] sm:$0xff] %vm231_vm0, %v778_v28  ;;  %827 = vst.msk [vmem:[#allocation2 + $0xe8] sm:$0xff] %vm231_vm0, %v794_v29 }
 0x138   : > { %v1290_v35 = vpack.c.bf16 %v891_v27, %v891_v27  ;;  %v892_v37 = vmax.f32 %v860_v33, 0.0 }
 0x139   : > { %1036 = vst.msk [vmem:[%s1611_s16 + $0x28] sm:$0xf] %vm1025_vm4, %v1274_v34  ;;  %v1275_v40 = vpack.c.bf16 %v876_v36, %v876_v36 }
 0x13a   : > { %1052 = vst.msk [vmem:[%s1611_s16 + $0x68] sm:$0xf] %vm1025_vm4, %v1290_v35  ;;  %v1291_v41 = vpack.c.bf16 %v892_v37, %v892_v37  ;;  %v694_v42 = vpop.f32.mrb[28].mxu0  ;;  %v758_v43 = vpop.f32.mrb[28].mxu1 }
 0x13b   : > { %1037 = vst.msk [vmem:[%s1611_s16 + $0x2c] sm:$0xf] %vm1025_vm4, %v1275_v40  ;;  %v779_v46 = vadd.f32 %v694_v42, %v278_v38  ;;  %v795_v47 = vadd.f32 %v758_v43, %v294_v39  ;;  %v696_v48 = vpop.f32.mrb[29].mxu0  ;;  %v760_v49 = vpop.f32.mrb[29].mxu1 }
 0x13c   : > { %1053 = vst.msk [vmem:[%s1611_s16 + $0x6c] sm:$0xf] %vm1025_vm4, %v1291_v41  ;;  %v845_v50 = vld [vmem:[#allocation2 + $0x60] sm:$0xff]  ;;  %v697_v52 = vpop.f32.mrb[30].mxu0  ;;  %v761_v53 = vpop.f32.mrb[30].mxu1 }
 0x13d   : > { %v861_v51 = vld [vmem:[#allocation2 + $0xe0] sm:$0xff]  ;;  %v877_v54 = vmax.f32 %v845_v50, 0.0  ;;  %812 = vst.msk [vmem:[#allocation2 + $0x70] sm:$0xff] %vm231_vm0, %v779_v46  ;;  %828 = vst.msk [vmem:[#allocation2 + $0xf0] sm:$0xff] %vm231_vm0, %v795_v47  ;;  %v780_v56 = vadd.f32 %v697_v52, %v279_v44  ;;  %v796_v57 = vadd.f32 %v761_v53, %v295_v45  ;;  %v699_v58 = vpop.f32.mrb[31].mxu0  ;;  %v763_v59 = vpop.f32.mrb[31].mxu1 }
 0x13e   : > { %v893_v55 = vmax.f32 %v861_v51, 0.0  ;;  %v846_v60 = vld [vmem:[#allocation2 + $0x68] sm:$0xff] }
 0x13f   : > { %v862_v61 = vld [vmem:[#allocation2 + $0xe8] sm:$0xff]  ;;  %v1276_v62 = vpack.c.bf16 %v877_v54, %v877_v54  ;;  %v878_v0 = vmax.f32 %v846_v60, 0.0  ;;  %813 = vst.msk [vmem:[#allocation2 + $0x78] sm:$0xff] %vm231_vm0, %v780_v56  ;;  %829 = vst.msk [vmem:[#allocation2 + $0xf8] sm:$0xff] %vm231_vm0, %v796_v57 }
 0x140   : > { %v1292_v63 = vpack.c.bf16 %v893_v55, %v893_v55  ;;  %v894_v1 = vmax.f32 %v862_v61, 0.0 }
 0x141   : > { %1038 = vst.msk [vmem:[%s1611_s16 + $0x30] sm:$0xf] %vm1025_vm4, %v1276_v62  ;;  %v1277_v2 = vpack.c.bf16 %v878_v0, %v878_v0 }
 0x142   : > { %1054 = vst.msk [vmem:[%s1611_s16 + $0x70] sm:$0xf] %vm1025_vm4, %v1292_v63  ;;  %v1293_v3 = vpack.c.bf16 %v894_v1, %v894_v1 }
 0x143   : > { %1039 = vst.msk [vmem:[%s1611_s16 + $0x34] sm:$0xf] %vm1025_vm4, %v1277_v2 }
 0x144   : > { %1055 = vst.msk [vmem:[%s1611_s16 + $0x74] sm:$0xf] %vm1025_vm4, %v1293_v3  ;;  %v847_v4 = vld [vmem:[#allocation2 + $0x70] sm:$0xff] }
 0x145   : > { %v863_v5 = vld [vmem:[#allocation2 + $0xf0] sm:$0xff]  ;;  %v879_v6 = vmax.f32 %v847_v4, 0.0 }
 0x146   : > { %v895_v7 = vmax.f32 %v863_v5, 0.0  ;;  %v848_v8 = vld [vmem:[#allocation2 + $0x78] sm:$0xff] }
 0x147   : > { %v864_v9 = vld [vmem:[#allocation2 + $0xf8] sm:$0xff]  ;;  %v1278_v10 = vpack.c.bf16 %v879_v6, %v879_v6  ;;  %v880_v12 = vmax.f32 %v848_v8, 0.0 }
 0x148   : > { %v1294_v11 = vpack.c.bf16 %v895_v7, %v895_v7  ;;  %v896_v13 = vmax.f32 %v864_v9, 0.0 }
 0x149   : > { %1040 = vst.msk [vmem:[%s1611_s16 + $0x38] sm:$0xf] %vm1025_vm4, %v1278_v10  ;;  %v1279_v14 = vpack.c.bf16 %v880_v12, %v880_v12 }
 0x14a   : > { %1056 = vst.msk [vmem:[%s1611_s16 + $0x78] sm:$0xf] %vm1025_vm4, %v1294_v11  ;;  %v1295_v15 = vpack.c.bf16 %v896_v13, %v896_v13 }
 0x14b   : > { %1041 = vst.msk [vmem:[%s1611_s16 + $0x3c] sm:$0xf] %vm1025_vm4, %v1279_v14 }
 0x14c   : > { %1057 = vst.msk [vmem:[%s1611_s16 + $0x7c] sm:$0xf] %vm1025_vm4, %v1295_v15 }
 0x14d PF: > { %s12_s11 = sadd.s32 1, %s1423_s11   ;;  %s1715_s9 = smov %s1419_s10 }
 0x14e   : > { %p9_p5 = scmp.ge.s32.totalorder %s12_s11, 4   ;;  %s1716_s10 = smov %s1718_s12 }
 0x150   :  { %11 = sbr.rel (!%p9_p5) target bundleno = 2 (0x2), region = 69 }

</bundles_post_ra>
